<compile_context>
chip_gen: v7x
topology: tpu7x:2x2x1
jax: 0.10.0
libtpu: 0.0.40
codegen_flags: <defaults>
</compile_context>

<pallas_src>
import functools

import jax
import jax.numpy as jnp
from jax.experimental import pallas as pl
from jax.experimental.pallas import tpu as pltpu

BN_EPS = 1e-5


def _fusion_kernel(x1_ref, x2_ref, w1a_ref, w1b_ref, scale_ref, bias_ref,
                   w2_ref, w3_ref, o_ref, sum_ref, se_ref, *stash,
                   inv_hw, hw, thw, use_stash, needs_mask):
    """Grid = (batch, pass, hw_tile).  Pass 0: fm (+stash) + pool + SE.  Pass 1: scale+store."""
    p = pl.program_id(1)
    t = pl.program_id(2)
    last_t = pl.num_programs(2) - 1
    fm_stash_ref = stash[0] if use_stash else None

    def compute_fm():
        # 1x1 conv on concat([x1, x2]) == W1a @ x1 + W1b @ x2 (no concat, no extra HBM pass).
        fm = (jnp.dot(w1a_ref[...], x1_ref[0], preferred_element_type=jnp.float32) +
              jnp.dot(w1b_ref[...], x2_ref[0], preferred_element_type=jnp.float32))
        fm = fm * scale_ref[...] + bias_ref[...]          # folded inference-mode BN
        return jnp.maximum(fm, 0.0)                       # ReLU

    # ---- pass 0: compute fm, accumulate global-average-pool sum, finalize SE gate ----
    @pl.when(jnp.logical_and(p == 0, t == 0))
    def _init_pool():
        sum_ref[...] = jnp.zeros_like(sum_ref)

    @pl.when(p == 0)
    def _pass0():
        fm = compute_fm()
        if use_stash:
            fm_stash_ref[t] = fm.astype(fm_stash_ref.dtype)
        if needs_mask:
            # Padded lanes (beyond the true HW) must not contribute to the pool.
            lane = jax.lax.broadcasted_iota(jnp.int32, fm.shape, 1)
            fm = jnp.where(t * thw + lane < hw, fm, 0.0)
        sum_ref[...] = sum_ref[...] + jnp.sum(fm, axis=1, keepdims=True)

    @pl.when(jnp.logical_and(p == 0, t == last_t))
    def _finalize_se():
        pooled = sum_ref[...] * inv_hw                    # (Cout, 1) global average pool
        h = jnp.maximum(
            jnp.dot(w2_ref[...], pooled, preferred_element_type=jnp.float32), 0.0)
        # Store (1 + sigmoid) so pass 1 is a single multiply (no per-tile "+1").
        se_ref[...] = 1.0 + jax.nn.sigmoid(
            jnp.dot(w3_ref[...], h, preferred_element_type=jnp.float32))

    # ---- pass 1: output = fm * (1 + se) ----
    @pl.when(p == 1)
    def _pass1():
        fm = fm_stash_ref[t].astype(jnp.float32) if use_stash else compute_fm()
        o_ref[0] = (fm * se_ref[...]).astype(o_ref.dtype)


def _round_up(x, m):
    return ((x + m - 1) // m) * m


def _choose_tiling(hw, target):
    """Pick (thw, n_tiles, hw_pad): thw a multiple of 128, hw_pad = n_tiles * thw >= hw."""
    target = max(128, (target // 128) * 128)
    if hw <= target:
        thw = _round_up(hw, 128)
        return thw, 1, thw
    # Prefer an exact multiple-of-128 divisor (no padding) when one is big enough.
    if hw % 128 == 0:
        best = max((c for c in range(128, target + 1, 128) if hw % c == 0), default=0)
        if best >= target // 2:
            return best, hw // best, hw
    # Otherwise: near-equal tiles, padded up to a lane multiple (masked pooling).
    n_tiles = -(-hw // target)
    thw = _round_up(-(-hw // n_tiles), 128)
    return thw, n_tiles, thw * n_tiles


def feature_fusion(x1, x2, params, *, hw_tile_target=2048, compute_dtype=None,
                   use_stash=None, stash_budget_bytes=40 * 2**20):
    """x1: (N, C1, H, W), x2: (N, C2, H, W).  Returns (N, Cout, H, W)."""
    w1, bn_scale, bn_bias, w2, w3 = params
    n, c1, h, w = x1.shape
    c2 = x2.shape[1]
    cout = w1.shape[0]
    mid = w2.shape[0]
    hw = h * w

    thw, n_tiles, hw_pad = _choose_tiling(hw, hw_tile_target)
    needs_mask = hw_pad != hw

    # NCHW -> (N, C, H*W): free reshape (channels on sublane, spatial on lane).
    x1f = x1.reshape(n, c1, hw)
    x2f = x2.reshape(n, c2, hw)
    if needs_mask:
        pad = ((0, 0), (0, 0), (0, hw_pad - hw))
        x1f = jnp.pad(x1f, pad)
        x2f = jnp.pad(x2f, pad)

    # Split W1 (Cout, Cin) by input-channel group (tiny slices).
    w1a = w1[:, :c1]
    w1b = w1[:, c1:]
    if compute_dtype is not None:
        x1f = x1f.astype(compute_dtype)
        x2f = x2f.astype(compute_dtype)
        w1a = w1a.astype(compute_dtype)
        w1b = w1b.astype(compute_dtype)
    scale = bn_scale.reshape(cout, 1).astype(jnp.float32)
    bias = bn_bias.reshape(cout, 1).astype(jnp.float32)

    is_bf16 = (compute_dtype is not None and
               jnp.dtype(compute_dtype) == jnp.dtype(jnp.bfloat16))
    stash_dtype = jnp.bfloat16 if is_bf16 else jnp.float32

    # ---- VMEM budgeting: full-image fm stash when it fits, else recompute path ----
    in_item = jnp.dtype(x1f.dtype).itemsize
    out_item = jnp.dtype(x1.dtype).itemsize
    fixed = (2 * ((c1 + c2) * thw * in_item + cout * thw * out_item)         # dbl-buffered tiles
             + 2 * (cout * (c1 + c2) * in_item + 2 * cout * 4 + 2 * mid * cout * 4)  # weights
             + 2 * cout * 4 + (1 << 20))                                     # scratch + slack
    stash_bytes = n_tiles * cout * thw * jnp.dtype(stash_dtype).itemsize
    if use_stash is None:
        use_stash = fixed + stash_bytes <= stash_budget_bytes
    vmem_need = fixed + (stash_bytes if use_stash else 0)
    vmem_limit = int(min(max(vmem_need * 5 // 4, 32 * 2**20), 64 * 2**20))

    if use_stash:
        # Pass 1 reads the stash: pin x1/x2 on their last pass-0 tile so no input
        # DMAs are issued during the second pass.
        x_map = lambda i, p, t: (i, 0, t * (1 - p) + (n_tiles - 1) * p)
        scratch = [pltpu.VMEM((cout, 1), jnp.float32),              # pool-sum accumulator
                   pltpu.VMEM((cout, 1), jnp.float32),              # (1 + sigmoid) gate
                   pltpu.VMEM((n_tiles, cout, thw), stash_dtype)]   # full-image fm stash
    else:
        x_map = lambda i, p, t: (i, 0, t)
        scratch = [pltpu.VMEM((cout, 1), jnp.float32),
                   pltpu.VMEM((cout, 1), jnp.float32)]

    kernel = functools.partial(
        _fusion_kernel, inv_hw=1.0 / hw, hw=hw, thw=thw,
        use_stash=use_stash, needs_mask=needs_mask)

    out = pl.pallas_call(
        kernel,
        out_shape=jax.ShapeDtypeStruct((n, cout, hw_pad), x1.dtype),
        grid_spec=pltpu.PrefetchScalarGridSpec(
            num_scalar_prefetch=0,
            grid=(n, 2, n_tiles),                      # (batch, pass, hw tile)
            in_specs=[
                pl.BlockSpec((1, c1, thw), x_map),
                pl.BlockSpec((1, c2, thw), x_map),
                # TODO(synk): pipeline_mode=pl.Buffered(1) on these resident weight
                # blocks would shave a little VMEM on v7x.
                pl.BlockSpec((cout, c1), lambda i, p, t: (0, 0)),
                pl.BlockSpec((cout, c2), lambda i, p, t: (0, 0)),
                pl.BlockSpec((cout, 1), lambda i, p, t: (0, 0)),
                pl.BlockSpec((cout, 1), lambda i, p, t: (0, 0)),
                pl.BlockSpec((mid, cout), lambda i, p, t: (0, 0)),
                pl.BlockSpec((cout, mid), lambda i, p, t: (0, 0)),
            ],
            # t*p pins the output block at tile 0 during pass 0; the block is only
            # flushed to HBM when its index changes, i.e. after pass 1 has written it
            # (standard matmul-accumulator writeback semantics; no junk flush).
            out_specs=pl.BlockSpec((1, cout, thw), lambda i, p, t: (i, 0, t * p)),
            scratch_shapes=scratch,
        ),
        compiler_params=pltpu.CompilerParams(
            # Only the batch axis is parallel: sum_ref requires each batch item's
            # whole (pass, tile) subtree to execute on one core.
            # TODO(synk): for N=1 inference on v7x, split the HW-tile axis across the
            # two TensorCores with per-core partial pools combined before the SE gate.
            dimension_semantics=("parallel", "arbitrary", "arbitrary"),
            vmem_limit_bytes=vmem_limit),
    )(x1f, x2f, w1a, w1b, scale, bias, w2, w3)

    if needs_mask:
        out = out[:, :, :hw]
    return out.reshape(n, cout, h, w)          # free reshape back to NCHW


def init_params(key, in_planes, out_planes, reduction=1):
    """Deterministic synthetic parameters in PyTorch (out, in) conv layout."""
    k1, k2, k3, k4, k5, k6 = jax.random.split(key, 6)
    mid = out_planes // reduction

    w1 = jax.random.normal(k1, (out_planes, in_planes), jnp.float32) * 0.1
    gamma = 1.0 + 0.1 * jax.random.normal(k2, (out_planes,), jnp.float32)
    beta = 0.1 * jax.random.normal(k3, (out_planes,), jnp.float32)
    running_mean = 0.05 * jax.random.normal(k4, (out_planes,), jnp.float32)
    running_var = jnp.abs(1.0 + 0.1 * jax.random.normal(k5, (out_planes,), jnp.float32))
    bn_scale = gamma / jnp.sqrt(running_var + BN_EPS)
    bn_bias = beta - running_mean * bn_scale
    k6a, k6b = jax.random.split(k6)
    w2 = jax.random.normal(k6a, (mid, out_planes), jnp.float32) * 0.1
    w3 = jax.random.normal(k6b, (out_planes, mid), jnp.float32) * 0.1
    return (w1, bn_scale, bn_bias, w2, w3)


def feature_fusion_ref(x1, x2, params):
    """Pure-JAX reference (inference-mode BN)."""
    w1, bn_scale, bn_bias, w2, w3 = params
    fm = jnp.concatenate([x1, x2], axis=1)                     # (N, Cin, H, W)
    fm = jnp.einsum('oc,nchw->nohw', w1, fm)
    fm = fm * bn_scale[None, :, None, None] + bn_bias[None, :, None, None]
    fm = jnp.maximum(fm, 0.0)
    pooled = jnp.mean(fm, axis=(2, 3))                         # (N, Cout)
    h = jnp.maximum(jnp.einsum('mo,no->nm', w2, pooled), 0.0)  # (N, mid)
    se = jax.nn.sigmoid(jnp.einsum('om,nm->no', w3, h))        # (N, Cout)
    return fm + fm * se[:, :, None, None]


if __name__ == "__main__":
    key = jax.random.PRNGKey(0)
    kx1, kx2, kp = jax.random.split(key, 3)

    N, C1, C2, H, W = 2, 2, 2, 16, 16
    in_planes, out_planes = C1 + C2, 4

    x1 = jax.random.normal(kx1, (N, C1, H, W), jnp.float32)
    x2 = jax.random.normal(kx2, (N, C2, H, W), jnp.float32)
    params = init_params(kp, in_planes, out_planes, reduction=1)
    ref = feature_fusion_ref(x1, x2, params)

    # 1) stash path, tiled HW (hw_tile_target=128 -> THW=128, 2 tiles per image).
    out = jax.block_until_ready(feature_fusion(x1, x2, params, hw_tile_target=128))
    assert out.shape == (N, out_planes, H, W)
    assert jnp.allclose(out, ref, atol=1e-5, rtol=1e-5)

    # 2) fallback recompute path (stash disabled), same tiling.
    out2 = jax.block_until_ready(
        feature_fusion(x1, x2, params, hw_tile_target=128, use_stash=False))
    assert jnp.allclose(out2, ref, atol=1e-5, rtol=1e-5)

    # 3) ragged spatial size (7x7 -> padded to 128 lanes, masked pooling).
    x1r = jax.random.normal(kx1, (N, C1, 7, 7), jnp.float32)
    x2r = jax.random.normal(kx2, (N, C2, 7, 7), jnp.float32)
    outr = jax.block_until_ready(feature_fusion(x1r, x2r, params))
    refr = feature_fusion_ref(x1r, x2r, params)
    assert outr.shape == (N, out_planes, 7, 7)
    assert jnp.allclose(outr, refr, atol=1e-5, rtol=1e-5)

    print("KERNEL_OK")
</pallas_src>

<mosaic_0001>
module attributes {stable_mosaic.version = 11 : i64} {
  func.func @_fusion_kernel(%arg0: i32, %arg1: i32, %arg2: i32, %arg3: memref<1x2x128xf32, #tpu.memory_space<vmem>>, %arg4: memref<1x2x128xf32, #tpu.memory_space<vmem>>, %arg5: memref<4x2xf32, #tpu.memory_space<vmem>>, %arg6: memref<4x2xf32, #tpu.memory_space<vmem>>, %arg7: memref<4x1xf32, #tpu.memory_space<vmem>>, %arg8: memref<4x1xf32, #tpu.memory_space<vmem>>, %arg9: memref<4x4xf32, #tpu.memory_space<vmem>>, %arg10: memref<4x4xf32, #tpu.memory_space<vmem>>, %arg11: memref<1x4x128xf32, #tpu.memory_space<vmem>>, %arg12: memref<4x1xf32, #tpu.memory_space<vmem>>, %arg13: memref<4x1xf32, #tpu.memory_space<vmem>>, %arg14: memref<2x4x128xf32, #tpu.memory_space<vmem>>) attributes {dimension_semantics = [#tpu.dimension_semantics<parallel>, #tpu.dimension_semantics<arbitrary>, #tpu.dimension_semantics<arbitrary>], iteration_bounds = array<i64: 2, 2, 2>, scalar_prefetch = 0 : i64, scratch_operands = 3 : i64, tpu.core_type = #tpu.core_type<tc>, window_params = [{transform_indices = @transform_0, window_bounds = array<i64: 1, 2, 128>}, {transform_indices = @transform_1, window_bounds = array<i64: 1, 2, 128>}, {pipeline_mode = #tpu.pipeline_mode<synchronous>, transform_indices = @transform_2, window_bounds = array<i64: 4, 2>}, {pipeline_mode = #tpu.pipeline_mode<synchronous>, transform_indices = @transform_3, window_bounds = array<i64: 4, 2>}, {pipeline_mode = #tpu.pipeline_mode<synchronous>, transform_indices = @transform_4, window_bounds = array<i64: 4, 1>}, {pipeline_mode = #tpu.pipeline_mode<synchronous>, transform_indices = @transform_5, window_bounds = array<i64: 4, 1>}, {pipeline_mode = #tpu.pipeline_mode<synchronous>, transform_indices = @transform_6, window_bounds = array<i64: 4, 4>}, {pipeline_mode = #tpu.pipeline_mode<synchronous>, transform_indices = @transform_7, window_bounds = array<i64: 4, 4>}, {transform_indices = @transform_8, window_bounds = array<i64: 1, 4, 128>}]} {
    %c0_i32 = arith.constant 0 : i32
    %0 = arith.cmpi eq, %arg1, %c0_i32 : i32
    %c0_i32_0 = arith.constant 0 : i32
    %1 = arith.cmpi eq, %arg2, %c0_i32_0 : i32
    %2 = arith.andi %0, %1 : i1
    %3 = arith.extui %2 : i1 to i32
    %c0_i32_1 = arith.constant 0 : i32
    %4 = arith.cmpi ne, %3, %c0_i32_1 : i32
    scf.if %4 {
      %cst = arith.constant 0.000000e+00 : f32
      %16 = vector.broadcast %cst : f32 to vector<4x1xf32>
      %c0 = arith.constant 0 : index
      %c0_8 = arith.constant 0 : index
      %17 = vector.load %arg12[%c0, %c0_8] : memref<4x1xf32, #tpu.memory_space<vmem>>, vector<4x1xf32>
      tpu.vector_store %arg12[%c0, %c0_8], %16 {strides = array<i32>} : memref<4x1xf32, #tpu.memory_space<vmem>>, vector<4x1xf32>,
    } else {
    }
    %c0_i32_2 = arith.constant 0 : i32
    %5 = arith.cmpi eq, %arg1, %c0_i32_2 : i32
    %6 = arith.extui %5 : i1 to i32
    %c0_i32_3 = arith.constant 0 : i32
    %7 = arith.cmpi ne, %6, %c0_i32_3 : i32
    scf.if %7 {
      %c0 = arith.constant 0 : index
      %c0_8 = arith.constant 0 : index
      %16 = vector.load %arg5[%c0, %c0_8] : memref<4x2xf32, #tpu.memory_space<vmem>>, vector<4x2xf32>
      %c0_9 = arith.constant 0 : index
      %c0_10 = arith.constant 0 : index
      %c0_11 = arith.constant 0 : index
      %17 = vector.load %arg3[%c0_9, %c0_10, %c0_11] : memref<1x2x128xf32, #tpu.memory_space<vmem>>, vector<1x2x128xf32>
      %18 = vector.shape_cast %17 : vector<1x2x128xf32> to vector<2x128xf32>
      %cst = arith.constant dense<0.000000e+00> : vector<4x128xf32>
      %19 = tpu.matmul %16, %18, %cst {dimension_numbers = #tpu.dot_dimension_numbers<[1], [0], [0], [1], [0, 0, 1, 1], [], []>} : vector<4x2xf32>, vector<2x128xf32>, vector<4x128xf32> -> vector<4x128xf32>
      %c0_12 = arith.constant 0 : index
      %c0_13 = arith.constant 0 : index
      %20 = vector.load %arg6[%c0_12, %c0_13] : memref<4x2xf32, #tpu.memory_space<vmem>>, vector<4x2xf32>
      %c0_14 = arith.constant 0 : index
      %c0_15 = arith.constant 0 : index
      %c0_16 = arith.constant 0 : index
      %21 = vector.load %arg4[%c0_14, %c0_15, %c0_16] : memref<1x2x128xf32, #tpu.memory_space<vmem>>, vector<1x2x128xf32>
      %22 = vector.shape_cast %21 : vector<1x2x128xf32> to vector<2x128xf32>
      %cst_17 = arith.constant dense<0.000000e+00> : vector<4x128xf32>
      %23 = tpu.matmul %20, %22, %cst_17 {dimension_numbers = #tpu.dot_dimension_numbers<[1], [0], [0], [1], [0, 0, 1, 1], [], []>} : vector<4x2xf32>, vector<2x128xf32>, vector<4x128xf32> -> vector<4x128xf32>
      %24 = arith.addf %19, %23 : vector<4x128xf32>
      %c0_18 = arith.constant 0 : index
      %c0_19 = arith.constant 0 : index
      %25 = vector.load %arg7[%c0_18, %c0_19] : memref<4x1xf32, #tpu.memory_space<vmem>>, vector<4x1xf32>
      %26 = vector.broadcast %25 : vector<4x1xf32> to vector<4x128xf32>
      %27 = arith.mulf %24, %26 : vector<4x128xf32>
      %c0_20 = arith.constant 0 : index
      %c0_21 = arith.constant 0 : index
      %28 = vector.load %arg8[%c0_20, %c0_21] : memref<4x1xf32, #tpu.memory_space<vmem>>, vector<4x1xf32>
      %29 = vector.broadcast %28 : vector<4x1xf32> to vector<4x128xf32>
      %30 = arith.addf %27, %29 : vector<4x128xf32>
      %cst_22 = arith.constant 0.000000e+00 : f32
      %31 = vector.broadcast %cst_22 : f32 to vector<4x128xf32>
      %32 = arith.maximumf %30, %31 : vector<4x128xf32>
      %33 = arith.index_cast %arg2 : i32 to index
      %c0_23 = arith.constant 0 : index
      %c0_24 = arith.constant 0 : index
      %34 = vector.load %arg14[%33, %c0_23, %c0_24] : memref<2x4x128xf32, #tpu.memory_space<vmem>>, vector<1x4x128xf32>
      %35 = vector.shape_cast %34 : vector<1x4x128xf32> to vector<4x128xf32>
      %36 = vector.shape_cast %32 : vector<4x128xf32> to vector<1x4x128xf32>
      tpu.vector_store %arg14[%33, %c0_23, %c0_24], %36 {strides = array<i32>} : memref<2x4x128xf32, #tpu.memory_space<vmem>>, vector<1x4x128xf32>,
      %c0_25 = arith.constant 0 : index
      %c0_26 = arith.constant 0 : index
      %37 = vector.load %arg12[%c0_25, %c0_26] : memref<4x1xf32, #tpu.memory_space<vmem>>, vector<4x1xf32>
      %cst_27 = arith.constant dense<0.000000e+00> : vector<4xf32>
      %38 = vector.multi_reduction <add>, %32, %cst_27 [1] : vector<4x128xf32> to vector<4xf32>
      %39 = vector.shape_cast %38 : vector<4xf32> to vector<4x1xf32>
      %40 = arith.addf %37, %39 : vector<4x1xf32>
      %c0_28 = arith.constant 0 : index
      %c0_29 = arith.constant 0 : index
      %41 = vector.load %arg12[%c0_28, %c0_29] : memref<4x1xf32, #tpu.memory_space<vmem>>, vector<4x1xf32>
      tpu.vector_store %arg12[%c0_28, %c0_29], %40 {strides = array<i32>} : memref<4x1xf32, #tpu.memory_space<vmem>>, vector<4x1xf32>,
    } else {
    }
    %c0_i32_4 = arith.constant 0 : i32
    %8 = arith.cmpi eq, %arg1, %c0_i32_4 : i32
    %c1_i32 = arith.constant 1 : i32
    %9 = arith.cmpi eq, %arg2, %c1_i32 : i32
    %10 = arith.andi %8, %9 : i1
    %11 = arith.extui %10 : i1 to i32
    %c0_i32_5 = arith.constant 0 : i32
    %12 = arith.cmpi ne, %11, %c0_i32_5 : i32
    scf.if %12 {
      %c0 = arith.constant 0 : index
      %c0_8 = arith.constant 0 : index
      %16 = vector.load %arg12[%c0, %c0_8] : memref<4x1xf32, #tpu.memory_space<vmem>>, vector<4x1xf32>
      %cst = arith.constant 3.906250e-03 : f32
      %17 = vector.broadcast %cst : f32 to vector<4x1xf32>
      %18 = arith.mulf %16, %17 : vector<4x1xf32>
      %c0_9 = arith.constant 0 : index
      %c0_10 = arith.constant 0 : index
      %19 = vector.load %arg9[%c0_9, %c0_10] : memref<4x4xf32, #tpu.memory_space<vmem>>, vector<4x4xf32>
      %cst_11 = arith.constant dense<0.000000e+00> : vector<4x1xf32>
      %20 = tpu.matmul %19, %18, %cst_11 {dimension_numbers = #tpu.dot_dimension_numbers<[1], [0], [0], [1], [0, 0, 1, 1], [], []>} : vector<4x4xf32>, vector<4x1xf32>, vector<4x1xf32> -> vector<4x1xf32>
      %cst_12 = arith.constant 0.000000e+00 : f32
      %21 = vector.broadcast %cst_12 : f32 to vector<4x1xf32>
      %22 = arith.maximumf %20, %21 : vector<4x1xf32>
      %c0_13 = arith.constant 0 : index
      %c0_14 = arith.constant 0 : index
      %23 = vector.load %arg10[%c0_13, %c0_14] : memref<4x4xf32, #tpu.memory_space<vmem>>, vector<4x4xf32>
      %cst_15 = arith.constant dense<0.000000e+00> : vector<4x1xf32>
      %24 = tpu.matmul %23, %22, %cst_15 {dimension_numbers = #tpu.dot_dimension_numbers<[1], [0], [0], [1], [0, 0, 1, 1], [], []>} : vector<4x4xf32>, vector<4x1xf32>, vector<4x1xf32> -> vector<4x1xf32>
      %25 = arith.negf %24 : vector<4x1xf32>
      %26 = math.exp %25 : vector<4x1xf32>
      %cst_16 = arith.constant 1.000000e+00 : f32
      %27 = vector.broadcast %cst_16 : f32 to vector<4x1xf32>
      %28 = arith.addf %27, %26 : vector<4x1xf32>
      %29 = arith.divf %27, %28 : vector<4x1xf32>
      %cst_17 = arith.constant 1.000000e+00 : f32
      %30 = vector.broadcast %cst_17 : f32 to vector<4x1xf32>
      %31 = arith.addf %30, %29 : vector<4x1xf32>
      %c0_18 = arith.constant 0 : index
      %c0_19 = arith.constant 0 : index
      %32 = vector.load %arg13[%c0_18, %c0_19] : memref<4x1xf32, #tpu.memory_space<vmem>>, vector<4x1xf32>
      tpu.vector_store %arg13[%c0_18, %c0_19], %31 {strides = array<i32>} : memref<4x1xf32, #tpu.memory_space<vmem>>, vector<4x1xf32>,
    } else {
    }
    %c1_i32_6 = arith.constant 1 : i32
    %13 = arith.cmpi eq, %arg1, %c1_i32_6 : i32
    %14 = arith.extui %13 : i1 to i32
    %c0_i32_7 = arith.constant 0 : i32
    %15 = arith.cmpi ne, %14, %c0_i32_7 : i32
    scf.if %15 {
      %16 = arith.index_cast %arg2 : i32 to index
      %c0 = arith.constant 0 : index
      %c0_8 = arith.constant 0 : index
      %17 = vector.load %arg14[%16, %c0, %c0_8] : memref<2x4x128xf32, #tpu.memory_space<vmem>>, vector<1x4x128xf32>
      %18 = vector.shape_cast %17 : vector<1x4x128xf32> to vector<4x128xf32>
      %c0_9 = arith.constant 0 : index
      %c0_10 = arith.constant 0 : index
      %19 = vector.load %arg13[%c0_9, %c0_10] : memref<4x1xf32, #tpu.memory_space<vmem>>, vector<4x1xf32>
      %20 = vector.broadcast %19 : vector<4x1xf32> to vector<4x128xf32>
      %21 = arith.mulf %18, %20 : vector<4x128xf32>
      %c0_11 = arith.constant 0 : index
      %c0_12 = arith.constant 0 : index
      %c0_13 = arith.constant 0 : index
      %22 = vector.load %arg11[%c0_11, %c0_12, %c0_13] : memref<1x4x128xf32, #tpu.memory_space<vmem>>, vector<1x4x128xf32>
      %23 = vector.shape_cast %22 : vector<1x4x128xf32> to vector<4x128xf32>
      %24 = vector.shape_cast %21 : vector<4x128xf32> to vector<1x4x128xf32>
      tpu.vector_store %arg11[%c0_11, %c0_12, %c0_13], %24 {strides = array<i32>} : memref<1x4x128xf32, #tpu.memory_space<vmem>>, vector<1x4x128xf32>,
    } else {
    }
    return
  }
  func.func @transform_0(%arg0: i32, %arg1: i32, %arg2: i32) -> (i32, i32, i32) {
    %c1_i32 = arith.constant 1 : i32
    %0 = arith.subi %c1_i32, %arg1 : i32
    %1 = arith.muli %arg2, %0 : i32
    %c1_i32_0 = arith.constant 1 : i32
    %2 = arith.muli %c1_i32_0, %arg1 : i32
    %3 = arith.addi %1, %2 : i32
    %c0_i32 = arith.constant 0 : i32
    %c0_i32_1 = arith.constant 0 : i32
    return %arg0, %c0_i32, %3 : i32, i32, i32
  }
  func.func @transform_1(%arg0: i32, %arg1: i32, %arg2: i32) -> (i32, i32, i32) {
    %c1_i32 = arith.constant 1 : i32
    %0 = arith.subi %c1_i32, %arg1 : i32
    %1 = arith.muli %arg2, %0 : i32
    %c1_i32_0 = arith.constant 1 : i32
    %2 = arith.muli %c1_i32_0, %arg1 : i32
    %3 = arith.addi %1, %2 : i32
    %c0_i32 = arith.constant 0 : i32
    %c0_i32_1 = arith.constant 0 : i32
    return %arg0, %c0_i32, %3 : i32, i32, i32
  }
  func.func @transform_2(%arg0: i32, %arg1: i32, %arg2: i32) -> (i32, i32) {
    %c0_i32 = arith.constant 0 : i32
    %c0_i32_0 = arith.constant 0 : i32
    %c0_i32_1 = arith.constant 0 : i32
    return %c0_i32, %c0_i32_0 : i32, i32
  }
  func.func @transform_3(%arg0: i32, %arg1: i32, %arg2: i32) -> (i32, i32) {
    %c0_i32 = arith.constant 0 : i32
    %c0_i32_0 = arith.constant 0 : i32
    %c0_i32_1 = arith.constant 0 : i32
    return %c0_i32, %c0_i32_0 : i32, i32
  }
  func.func @transform_4(%arg0: i32, %arg1: i32, %arg2: i32) -> (i32, i32) {
    %c0_i32 = arith.constant 0 : i32
    %c0_i32_0 = arith.constant 0 : i32
    %c0_i32_1 = arith.constant 0 : i32
    return %c0_i32, %c0_i32_0 : i32, i32
  }
  func.func @transform_5(%arg0: i32, %arg1: i32, %arg2: i32) -> (i32, i32) {
    %c0_i32 = arith.constant 0 : i32
    %c0_i32_0 = arith.constant 0 : i32
    %c0_i32_1 = arith.constant 0 : i32
    return %c0_i32, %c0_i32_0 : i32, i32
  }
  func.func @transform_6(%arg0: i32, %arg1: i32, %arg2: i32) -> (i32, i32) {
    %c0_i32 = arith.constant 0 : i32
    %c0_i32_0 = arith.constant 0 : i32
    %c0_i32_1 = arith.constant 0 : i32
    return %c0_i32, %c0_i32_0 : i32, i32
  }
  func.func @transform_7(%arg0: i32, %arg1: i32, %arg2: i32) -> (i32, i32) {
    %c0_i32 = arith.constant 0 : i32
    %c0_i32_0 = arith.constant 0 : i32
    %c0_i32_1 = arith.constant 0 : i32
    return %c0_i32, %c0_i32_0 : i32, i32
  }
  func.func @transform_8(%arg0: i32, %arg1: i32, %arg2: i32) -> (i32, i32, i32) {
    %0 = arith.muli %arg2, %arg1 : i32
    %c0_i32 = arith.constant 0 : i32
    %c0_i32_0 = arith.constant 0 : i32
    return %arg0, %c0_i32, %0 : i32, i32, i32
  }
}

</mosaic_0001>

<bundles_post_ra>
// kernel: tpu_custom_call.1
= control target key start
LH: loop header
LB: loop body
LE: loop exit
PB: predicated region body
PF: predicated region fallthrough
CT: control target
= control target key end

     0   :  { %13 = vsyncpa [#allocation6], 0  ;;  %s1439_s0 = inlined_call_operand.vmem [shape: f32[2,2,256], index: 0, kind: input, shape index: {}]   ;;  %s1440_s1 = inlined_call_operand.vmem [shape: f32[2,2,256], index: 1, kind: input, shape index: {}]   ;;  %s1441_s2 = inlined_call_operand.vmem [shape: f32[4,2], index: 2, kind: input, shape index: {}]   ;;  %s1442_s3 = inlined_call_operand.vmem [shape: f32[4,2], index: 3, kind: input, shape index: {}]   ;;  %s1443_s4 = inlined_call_operand.vmem [shape: f32[4,1], index: 4, kind: input, shape index: {}]   ;;  %s1444_s5 = inlined_call_operand.vmem [shape: f32[4,1], index: 5, kind: input, shape index: {}]   ;;  %s1445_s6 = inlined_call_operand.vmem [shape: f32[4,4], index: 6, kind: input, shape index: {}]   ;;  %s1446_s7 = inlined_call_operand.vmem [shape: f32[4,4], index: 7, kind: input, shape index: {}]   ;;  %s1447_s8 = inlined_call_operand.hbm [shape: f32[2,4,256], index: 8, kind: output, shape index: {}]  }
   0x1   :  { %15 = vsyncpa [#allocation6 + $0x1], 0  ;;  %s1240_s27 = smov 0   ;;  %s1242_s28 = smov 0  }
   0x2   :  { %s1244_s29 = smov 0   ;;  %s1246_s30 = smov 0  }
   0x3   :  { %s1248_s9 = smov 0   ;;  %s1250_s10 = smov 0  }
   0x4   :  { %s1252_s11 = smov 0   ;;  %s1254_s12 = smov 0  }
   0x5   :  { %s1256_s13 = smov 0   ;;  %s1258_s14 = smov 0  }
   0x6 LB: > { %1456 = sst [smem:[#allocation8_spill]] %s1157_s29  ;;  %s918_s15 = sadd.s32 4294967295, %s1185_s14   ;;  %s1185_s14 = sphi %s1258_s14, %s21_s14   ;;  %s1181_s13 = sphi %s1256_s13, %s1474_s13   ;;  %s1177_s12 = sphi %s1254_s12, %s1473_s12   ;;  %s1173_s11 = sphi %s1252_s11, %s1472_s11   ;;  %s1169_s10 = sphi %s1250_s10, %s1471_s10   ;;  %s1165_s9 = sphi %s1248_s9, %s1470_s9   ;;  %s1161_s30 = sphi %s1246_s30, %s1469_s30   ;;  %s1157_s29 = sphi %s1244_s29, %s1468_s29   ;;  %s1153_s28 = sphi %s1242_s28, %s1476_s28   ;;  %s1149_s27 = sphi %s1240_s27, %s1475_s27  }
   0x7   : > { %1457 = sst [smem:[#allocation9_spill]] %s1173_s11  ;;  %s919_s16 = sadd.s32 4294967294, %s1185_s14  }
   0x8   : > { %1458 = sst [smem:[#allocation10_spill]] %s1177_s12  ;;  %s33_s17 = sadd.s32 1, %s1173_s11 }
   0x9   : > { %1459 = sst [smem:[#allocation11_spill]] %s1181_s13  ;;  %p34_p0 = scmp.ge.s32.totalorder %s33_s17, 2 }
   0xa   : > { %s36_s18 = sadd.s32 1, %s1177_s12  ;;  %s40_s19 = sadd.s32 1, %s1181_s13 }
   0xb   : > { %s238_s20 = smul.u32 %s1173_s11, %s1177_s12  ;;  %s1478_s17 = smov (%p34_p0, %s33_s17), 0 }
   0xc   : > { %1460 = sst [smem:[#allocation12_spill]] %s1478_s17  ;;  %s1480_s18 = smov (!%p34_p0, %s36_s18), %s1177_s12 }
   0xd   : > { %p255_p1 = scmp.ne.s32.totalorder %s1157_s29, %s1153_s28  ;;  %p256_p2 = scmp.eq.s32.totalorder %s918_s15, 7 }
   0xe   : > { %p38_p3 = scmp.ge.s32.totalorder %s1480_s18, 2  ;;  %p261_p4 = scmp.ne.s32.totalorder %s1153_s28, %s1149_s27 }
   0xf   : > { %p1304_p5 = por %p256_p2, %p255_p1  ;;  %p262_p6 = scmp.eq.s32.totalorder %s919_s16, 7 }
  0x10   : > { %s1482_s18 = smov (%p38_p3, %s1480_s18), 0  ;;  %s1484_s19 = smov (!%p38_p3, %s40_s19), %s1181_s13 }
  0x11   : > { %1462 = sst [smem:[#allocation13_spill]] %s1482_s18  ;;  %s239_s22 = smul.u32 %s1482_s18, %s1478_s17 }
  0x12   : > { %p1313_p7 = por %p262_p6, %p261_p4  ;;  %p42_p8 = scmp.ge.s32.totalorder %s1484_s19, 2 }
  0x13   : > { %p922_p9 = scmp.ge.s32.totalorder %s1185_s14, 1  ;;  %s241_s24 = ssub.s32 %s238_s20, %s239_s22 }
  0x14   : > { %p332_p10 = scmp.lt.s32.totalorder %s1185_s14, 9  ;;  %s1486_s19 = smov (%p42_p8, %s1484_s19), 0 }
  0x15   : > { %1464 = sst [smem:[#allocation14_spill]] %s1486_s19  ;;  %s240_s25 = ssub.s32 %s1181_s13, %s1486_s19 }
  0x16   : > { %p333_p11 = pnand %p922_p9, %p332_p10  ;;  %s242_s26 = sor.u32 %s241_s24, %s240_s25 }
  0x17   : > { %s245_s15 = sadd.s32 1, %s1157_s29  ;;  %p243_p12 = scmp.eq.s32.totalorder %s242_s26, 0 }
  0x18   : > { %336 = sbr.rel (%p333_p11) target bundleno = 1043 (0x413), region = 52  ;;  %s1454_s20 = sand.u32 (!%p333_p11), 1, %s1153_s28  }
  0x19   : > { %s1325_s16 = scalar_select %p243_p12, %s1157_s29, %s245_s15  }
  0x1a   : > { %s383_s22 = ssub.s32 (!%p333_p11), 1, %s1165_s9  ;;  %s1331_s19 = sshll.u32 (!%p333_p11), %s1454_s20, 2 }
  0x1b   : > { %1465 = sst [smem:[#allocation15_spill]] %s1325_s16  ;;  %s384_s24 = smul.u32 (!%p333_p11), %s1161_s30, %s383_s22 }
  0x1c   : > { %p386_p13 = scmp.lt.s32.totalorder (!%p333_p11), %s1169_s10, 1  ;;  %p412_p0 = scmp.eq.s32.totalorder (!%p333_p11), %s1165_s9, 0 }
  0x1d   : > { %s385_s25 = sadd.s32 (!%p333_p11), %s1165_s9, %s384_s24  ;;  %p413_p2 = scmp.eq.s32.totalorder (!%p333_p11), %s1161_s30, 0 }
  0x1e   : > { %p388_p1 = scmp.lt.s32.totalorder (!%p333_p11), %s385_s25, 1  ;;  %s382_s29 = scalar_lea.vmem (!%p333_p11), [#allocation5], %s1331_s19 }
  0x1f   : > { %s387_s26 = scalar_select %p386_p13, %s1169_s10, 1 }
  0x20   : > { %s1488_s25 = smov (!%p388_p1, %s385_s25), 1  ;;  %p414_p3 = pnand %p413_p2, %p412_p0 }
  0x21   : > { %s924_s15 = sshll.u32 %s387_s26, 1  ;;  %vm418_vm0 = vcmask (!%p414_p3), 3072   ;;  %v1187_v0 = vmov (!%p414_p3), 0.0  }
  0x22   : > { %s391_s18 = sadd.s32 %s924_s15, %s1488_s25  ;;  %417 = sbr.rel (%p414_p3) target bundleno = 41 (0x29), region = 56  ;;  %419 = vst.msk [vmem:[#allocation2] sm:$0xf] (!%p414_p3), %vm418_vm0, %v1187_v0 }
  0x23   : > { %s925_s17 = sshll.u32 %s391_s18, 1 }
  0x24   : > { %s393_s11 = scalar_lea.vmem %s1439_s0, %s925_s17  ;;  %s407_s22 = scalar_lea.vmem %s1440_s1, %s925_s17 }
  0x29 PF: > { %p928_p4 = scmp.ne.s32.totalorder %s1165_s9, 0 }
  0x2a   : > { %v426_v1 = vld [vmem:[%s407_s22] sm:$0x3] (!%p928_p4)  ;;  %vm431_vm1 = vcmask (!%p928_p4), 1041408   ;;  %vm427_vm2 = vcmask (!%p928_p4), 15360   ;;  %v1188_v2 = vmov (!%p928_p4), 0.0   ;;  %vm1189_vm3 = vmmov (!%p928_p4), 0  }
  0x2b   : > { %422 = sbr.rel (%p928_p4) target bundleno = 412 (0x19c), region = 60  ;;  %954 = vmatprep.subr.mxu1 (!%p928_p4), %v1188_v2  ;;  %959 = vmatprep.subr.mxu0 (!%p928_p4), %v1188_v2  ;;  %v424_v3 = vld [vmem:[%s393_s11] sm:$0x3] (!%p928_p4)  ;;  %v1190_v7 = vmov (!%p928_p4), 0   ;;  %s933_s25 = sshll.u32 (!%p928_p4), %s1161_s30, 2  ;;  %vm600_vm4 = vcmask (!%p928_p4), 1043456  }
  0x2c   : > { %v425_v4 = vld [vmem:[%s1442_s3] sm:$0xf] (!%p928_p4)  ;;  %955 = vmatpush3.msk.msra.mxu1 (!%p928_p4), %vm431_vm1, %v426_v1  ;;  %956 = vmatprep.mubr.msk.f32.mxu1 (!%p928_p4), %vm1189_vm3, %v1188_v2  ;;  %s597_s26 = scalar_lea.vmem (!%p928_p4), [#allocation4], %s933_s25  ;;  %vm605_vm5 = vcmask (!%p928_p4), 3072  }
  0x2d   : > { %v423_v5 = vld [vmem:[%s1441_s2] sm:$0xf] (!%p928_p4)  ;;  %960 = vmatpush3.msk.msra.mxu0 (!%p928_p4), %vm431_vm1, %v424_v3  ;;  %961 = vmatprep.mubr.msk.f32.mxu0 (!%p928_p4), %vm1189_vm3, %v1188_v2 }
  0x2e   : > { %v581_v6 = vld [vmem:[%s1443_s4] sm:$0xf] (!%p928_p4)  ;;  %957 = vmatmul.mubr.msk.f32.vlgmr.msra.gmra.mrb[0].mxu1 (!%p928_p4), %vm427_vm2, %v425_v4  ;;  %962 = vmatmul.mubr.msk.f32.vlgmr.msra.gmra.mrb[0].mxu0 (!%p928_p4), %vm427_vm2, %v423_v5 }
  0x2f   : > { %1069 = vset.pattern.permute.xlu0 (!%p928_p4), %v1190_v7  ;;  %v588_v8 = vld [vmem:[%s1444_s5] sm:$0xf] (!%p928_p4) }
  0x30   : > { %584 = vperm.xlu0 (!%p928_p4), %1069, %v581_v6   ;;  %v599_v20 = vld [vmem:[#allocation2] sm:$0xf] (!%p928_p4) }
  0x34   : > { %591 = vperm.xlu0 %1069, %v588_v8  }
  0xaf   : > { %v585_v9 = vpop.permute.xlu0 %584 }
  0xb3   : > { %v592_v16 = vpop.permute.xlu0 %591 }
 0x101   : > { %v501_v10 = vpop.f32.mrb[0].mxu1  ;;  %v577_v11 = vpop.f32.mrb[0].mxu0 }
 0x102   : > { %v578_v12 = vadd.f32 %v577_v11, %v501_v10  ;;  %v958_v13 = vpop.f32.mrb[1].mxu1  ;;  %v963_v14 = vpop.f32.mrb[1].mxu0 }
 0x104   : > { %v587_v15 = vmul.f32 %v585_v9, %v578_v12 }
 0x106   : > { %v594_v17 = vadd.f32 %v592_v16, %v587_v15 }
 0x108   : > { %v595_v18 = vmax.f32 %v594_v17, 0.0 }
 0x10a   : > { %v601_v19 = vsel %vm600_vm4, %v595_v18, 0.0  ;;  %598 = vst [vmem:[%s597_s26] sm:$0xf] %v595_v18 }
 0x10b   : > { %602 = vadd.xlane.f32.xlu1 %v601_v19 }
 0x198   : > { %v603_v21 = vpop.xlane.xlu1 %602 }
 0x199   : > { %v604_v22 = vadd.f32 %v603_v21, %v599_v20 }
 0x19b   : > { %606 = vst.msk [vmem:[#allocation2] sm:$0xf] %vm605_vm5, %v604_v22 }
 0x19c PF: > { %p607_p6 = scmp.eq.s32.totalorder %s1161_s30, 1 }
 0x19e   : > { %p608_p8 = pnand %p607_p6, %p412_p0 }
 0x19f   : > { %vm619_vm6 = vcmask (!%p608_p8), 1043456   ;;  %v1191_v24 = vmov (!%p608_p8), 0.0   ;;  %vm1192_vm7 = vmmov (!%p608_p8), 0   ;;  %v614_v26 = vld [vmem:[%s1445_s6] sm:$0xf] (!%p608_p8)  ;;  %vm615_vm8 = vcmask (!%p608_p8), 31744  }
 0x1a0   : > { %611 = sbr.rel (%p608_p8) target bundleno = 878 (0x36e), region = 64  ;;  %964 = vmatprep.subr.mxu0 (!%p608_p8), %v1191_v24  ;;  %966 = vmatprep.mubr.msk.f32.mxu0 (!%p608_p8), %vm1192_vm7, %v1191_v24  ;;  %v694_v30 = vld [vmem:[%s1446_s7] sm:$0xf] (!%p608_p8)  ;;  %vm778_vm9 = vcmask (!%p608_p8), 3072  }
 0x1a1   : > { %969 = vmatprep.subr.mxu1 (!%p608_p8), %v1191_v24  ;;  %971 = vmatprep.mubr.msk.f32.mxu1 (!%p608_p8), %vm1192_vm7, %v1191_v24 }
 0x1a2   : > { %v612_v23 = vld [vmem:[#allocation2] sm:$0xf] (!%p608_p8) }
 0x1a3   : > { %v613_v25 = vmul.f32 (!%p608_p8), 0.00390625, %v612_v23 }
 0x1a5   : > { %965 = vmatpush3.msk.msra.mxu0 (!%p608_p8), %vm619_vm6, %v613_v25 }
 0x1a6   : > { %967 = vmatmul.mubr.msk.f32.vlgmr.msra.gmra.mrb[0].mxu0 (!%p608_p8), %vm615_vm8, %v614_v26 }
 0x279   : > { %v689_v27 = vpop.f32.mrb[0].mxu0 }
 0x27a   : > { %v693_v28 = vmax.f32 %v689_v27, 0.0  ;;  %v968_v29 = vpop.f32.mrb[1].mxu0 }
 0x27c   : > { %970 = vmatpush3.msk.msra.mxu1 %vm619_vm6, %v693_v28 }
 0x27d   : > { %972 = vmatmul.mubr.msk.f32.vlgmr.msra.gmra.mrb[0].mxu1 %vm615_vm8, %v694_v30 }
 0x350   : > { %v767_v31 = vpop.f32.mrb[0].mxu1 }
 0x351   : > { %v938_v32 = vmul.f32 -1.442695, %v767_v31  ;;  %v973_v33 = vpop.f32.mrb[1].mxu1 }
 0x353   : > { %1070 = vpow2.f32 %v938_v32 }
 0x35d   : > { %v1071_v34 = vpop.eup %1070 }
 0x35e   : > { %v774_v35 = vadd.f32 1.0, %v1071_v34 }
 0x360   : > { %1072 = vrcp.f32 %v774_v35 }
 0x36a   : > { %v1073_v36 = vpop.eup %1072 }
 0x36b   : > { %v777_v37 = vadd.f32 1.0, %v1073_v36 }
 0x36d   : > { %779 = vst.msk [vmem:[#allocation3] sm:$0xf] %vm778_vm9, %v777_v37 }
 0x36e PF: > { %p939_p9 = scmp.ne.s32.totalorder %s1165_s9, 1 }
 0x36f   : > { %v1193_v39 = vmov (!%p939_p9), 0   ;;  %s940_s17 = sshll.u32 (!%p939_p9), %s1161_s30, 2 }
 0x370   : > { %783 = sbr.rel (%p939_p9) target bundleno = 1016 (0x3f8), region = 68  ;;  %1074 = vset.pattern.permute.xlu0 (!%p939_p9), %v1193_v39  ;;  %s785_s18 = scalar_lea.vmem (!%p939_p9), [#allocation4], %s940_s17 }
 0x371   : > { %v786_v40 = vld [vmem:[%s785_s18] sm:$0xf] (!%p939_p9) }
 0x374   : > { %v787_v38 = vld [vmem:[#allocation3] sm:$0xf] (!%p939_p9) }
 0x375   : > { %790 = vperm.xlu0 (!%p939_p9), %1074, %v787_v38  }
 0x3f4   : > { %v791_v41 = vpop.permute.xlu0 %790 }
 0x3f5   : > { %v793_v42 = vmul.f32 %v791_v41, %v786_v40 }
 0x3f7   : > { %794 = vst [vmem:[%s382_s29] sm:$0xf] %v793_v42 }
 0x3f8 PF: > { %s803_s16 = smul.u32 %s1161_s30, %s1165_s9  ;;  %s942_s20 = sshll.u32 %s1169_s10, 1 }
 0x3f9   : > { %s812_s11 = sshll.u32 %s382_s29, 4  ;;  %s1466_s12 = sand.u32 1, %s1153_s28   ;;  %s1382_s11 = int_to_ptr.vmem [resolvable:$true] %s812_s11 }
 0x3fa   : > { %s808_s24 = sadd.s32 %s942_s20, %s803_s16  ;;  %s796_s13 = scalar_lea.sflag [#allocation6], %s1466_s12 }
 0x3fb   : > { %s943_s25 = sshll.u32 %s808_s24, 6  ;;  %s1075_s17 = scalar_lea.vmem %s1382_s11, 64 }
 0x3fc   : > { %s810_s22 = scalar_lea.hbm %s1447_s8, %s943_s25  ;;  %p1076_p10 = scmp.ne.s32.totalorder %s1382_s11, %s1075_s17 }
 0x3fd   : > { %s1194_s30 = smov [#allocation5]  }
 0x3fe   : > { %p1077_p11 = pnand %p1076_p10, %p1304_p5  ;;  %s1079_s29 = sshll.u32 %s1194_s30, 4  ;;  %s1080_s29 = int_to_ptr.vmem [resolvable:$false] %s1079_s29 }
 0x3ff   : > { %s1081_s9 = scalar_lea.vmem %s1080_s29, 128  ;;  %p1082_p13 = scmp.lt.s32.totalorder %s1382_s11, %s1080_s29 }
 0x400   : > { %p1078_p12 = pneg %p1077_p11  ;;  %p1083_p0 = scmp.lt.s32.totalorder %s1081_s9, %s1075_s17 }
 0x402   : > { %p1084_p1 = por %p1083_p0, %p1082_p13 }
 0x404   : > { %p1085_p2 = pnand %p1084_p1, %p1078_p12 }
 0x406   : > { %1088 = shalt.err (!%p1085_p2)
}
 0x407   : > { %s1089_s10 = scalar_lea.hbm %s810_s22, 64  ;;  %s1093_s16 = scalar_lea.hbm %s1447_s8, 256 }
 0x408   : > { %p1090_p3 = scmp.ne.s32.totalorder %s810_s22, %s1089_s10  ;;  %p1094_p8 = scmp.lt.u32.totalorder %s810_s22, %s1447_s8 }
 0x409   : > { %p1095_p9 = scmp.lt.u32.totalorder %s1093_s16, %s1089_s10  ;;  %p1097_p11 = scmp.lt.u32.totalorder %s1089_s10, %s810_s22 }
 0x40a   : > { %p1091_p4 = pnand %p1090_p3, %p1304_p5 }
 0x40b   : > { %p1096_p10 = por %p1095_p9, %p1094_p8 }
 0x40c   : > { %p1092_p6 = pneg %p1091_p4 }
 0x40d   : > { %p1098_p13 = por %p1097_p11, %p1096_p10 }
 0x40f   : > { %p1099_p12 = pnand %p1098_p13, %p1092_p6 }
 0x411   : > { %1102 = shalt.err (!%p1099_p12)
}
 0x412   : > { %975 = dma.vmem_to_hbm [thread:$0]  (%p1304_p5), %s1382_s11, 64, %s810_s22, %s796_s13  }
 0x413 PF: > { %p981_p0 = scmp.ge.s32.totalorder %s1185_s14, 2  ;;  %s824_s25 = sand.u32 1, %s1149_s27  }
 0x414   : > { %s825_s26 = scalar_lea.sflag [#allocation6], %s824_s25 }
 0x415   : > { %p978_p1 = pnand %p981_p0, %p1313_p7 }
 0x417   : > { %1144 = dma.done.wait (!%p978_p1), %s825_s26, 64  }
 0x418   : > { %1146 = vsyncadd (!%p978_p1), %s825_s26, 4294967232  ;;  %s21_s14 = sadd.s32 1, %s1185_s14   ;;  %s1467_s15 = sld [smem:[#allocation8_spill]] }
 0x419   : > { %p18_p2 = scmp.ge.s32.totalorder %s21_s14, 10   ;;  %s1468_s29 = sld [smem:[#allocation15_spill]] }
 0x41a   : > { %s1469_s30 = sld [smem:[#allocation9_spill]]  ;;  %s1470_s9 = sld [smem:[#allocation10_spill]] }
 0x41b   : > { %s1471_s10 = sld [smem:[#allocation11_spill]]  ;;  %s1472_s11 = sld [smem:[#allocation12_spill]] }
 0x41c   : > { %s1473_s12 = sld [smem:[#allocation13_spill]]  ;;  %s1474_s13 = sld [smem:[#allocation14_spill]] }
 0x41d   : > { %s1475_s27 = smov %s1153_s28  ;;  %20 = sbr.rel (!%p18_p2) target bundleno = 6 (0x6), region = 108 }
 0x41e   : > { %s1476_s28 = smov %s1467_s15 }
 0x424   :  { %830 = vsyncpa [#allocation6], 1 }
 0x425   :  { %832 = vsyncpa [#allocation6 + $0x1], 1 }

</bundles_post_ra>
